<compile_context>
chip_gen: v6e
topology: v6e:2x2x1
jax: 0.10.0
libtpu: 0.0.40
codegen_flags: <defaults>
</compile_context>

<pallas_src>
import math

import jax
import jax.numpy as jnp
from jax.experimental import pallas as pl
from jax.experimental.pallas import tpu as pltpu

BN_EPS = 1e-5
LANE = 128
HARD_TILE_CAP = 32768  # max lane columns per block (f32); >= 16384 per review

KEY_OUTPUT = "output"
KEY_FEAT = "feat"
KEY_T_FEAT = "t_feat"
KEY_S_FEAT = "s_feat"


# ----------------------------------------------------------------------------
# Generation-aware VMEM budget
# ----------------------------------------------------------------------------
def _pick_vmem_limit():
    """~75% of physical VMEM (96 MiB on v5e/v6e, 48 MiB on v7x); safe fallback."""
    try:
        info = pltpu.get_tpu_info()
        for name in ("vmem_capacity_bytes", "vmem_size_bytes", "vmem_bytes"):
            cap = getattr(info, name, None)
            if cap:
                return min(max(int(cap) * 3 // 4, 32 * 1024 * 1024),
                           96 * 1024 * 1024)
    except Exception:
        pass
    return 48 * 1024 * 1024  # fits v7x's 64 MiB physical VMEM


VMEM_LIMIT = _pick_vmem_limit()


# ----------------------------------------------------------------------------
# Tiling plan: lane-dense tiles, no partial blocks, batch folded when small
# ----------------------------------------------------------------------------
def _round_up(x, m):
    return (x + m - 1) // m * m


def _plan_blocks(width, n_batch, bytes_per_lane_per_n):
    """Return (nb, lane_tile, padded_width).

    * lane_tile is a multiple of 128 that EXACTLY divides padded_width, so the
      grid never has partial blocks (reductions never see OOB garbage).
    * nb folds the whole batch into a single block when that fits comfortably
      in VMEM (fewer grid trips at small problem sizes); otherwise nb = 1.
    * bytes_per_lane_per_n: VMEM bytes per lane column per batch row across all
      double-buffered in/out blocks of the heaviest pass using this plan.
    """
    budget = VMEM_LIMIT // 2  # leave half of VMEM as headroom
    w128 = _round_up(width, LANE)
    if n_batch * bytes_per_lane_per_n * w128 <= budget and w128 <= HARD_TILE_CAP:
        return n_batch, w128, w128
    cap = min(HARD_TILE_CAP, budget // max(bytes_per_lane_per_n, 1))
    cap = max(LANE, cap // LANE * LANE)
    if w128 <= cap:
        return 1, w128, w128
    num = -(-width // cap)                       # ceil
    tile = _round_up(-(-width // num), LANE)
    return 1, tile, tile * num


def _pad_lanes(x, padded):
    if x.shape[-1] == padded:
        return x
    pad = [(0, 0)] * (x.ndim - 1) + [(0, padded - x.shape[-1])]
    return jnp.pad(x, pad)


# ----------------------------------------------------------------------------
# Pallas kernel: teacher transform  max(feat, margin)
# ----------------------------------------------------------------------------
def _max_margin_kernel(x_ref, m_ref, o_ref):
    o_ref[...] = jnp.maximum(x_ref[...], m_ref[...])


def teacher_transform_pallas(feat_nchw, margin_col):
    """feat: (N, C, H, W) f32, margin_col: (C, 1) f32 -> (N, C, H, W) f32."""
    N, C, H, W = feat_nchw.shape
    hw = H * W

    if hw >= LANE:
        # Channels on sublanes, H*W on lanes; margin resident as a (C, 1) column.
        rows, width = C, hw
        nb, tile, padded = _plan_blocks(width, N, 16 * rows)
        x = _pad_lanes(feat_nchw.reshape(N, C, hw), padded)
        m = margin_col                                           # (C, 1)
        m_spec = pl.BlockSpec((C, 1), lambda i, t: (0, 0))
    else:
        # Small H*W (e.g. 8x8): flatten C*H*W onto lanes so stores are lane-dense
        # unmasked vst; margin pre-broadcast once (tiny, read tiled).
        rows, width = 1, C * hw
        nb, tile, padded = _plan_blocks(width, N, 16 * rows)
        x = _pad_lanes(feat_nchw.reshape(N, 1, width), padded)
        m = _pad_lanes(jnp.broadcast_to(margin_col, (C, hw)).reshape(1, width),
                       padded)
        m_spec = pl.BlockSpec((1, tile), lambda i, t: (0, t))

    out = pl.pallas_call(
        _max_margin_kernel,
        out_shape=jax.ShapeDtypeStruct((N, rows, padded), jnp.float32),
        grid=(N // nb, padded // tile),
        in_specs=[
            pl.BlockSpec((nb, rows, tile), lambda i, t: (i, 0, t)),
            m_spec,
        ],
        out_specs=pl.BlockSpec((nb, rows, tile), lambda i, t: (i, 0, t)),
        compiler_params=pltpu.CompilerParams(
            dimension_semantics=("parallel", "parallel"),
            vmem_limit_bytes=VMEM_LIMIT,
        ),
    )(x, m)
    return out[:, :, :width].reshape(N, C, H, W)


# ----------------------------------------------------------------------------
# Pallas kernels: student transform = 1x1 conv + BatchNorm2d (train mode)
#   pass 1: per-block partial sum(z), sum(z^2)  (fully parallel, megacore-safe)
#   finalize: tiny mean/var -> scale/shift in plain JAX (var clamped >= 0)
#   pass 2: z = W @ x recomputed, out = z * scale + shift
# (conv bias omitted: exactly cancelled by train-mode BN mean subtraction)
# ----------------------------------------------------------------------------
def _conv_bn_train_pallas(x3, w, gamma_col, beta_col, true_count):
    """x3: (Nv, Cs, W0) f32, w: (Ct, Cs), gamma/beta: (Ct, 1) -> (Nv, Ct, W0)."""
    Nv, Cs, W0 = x3.shape
    Ct = w.shape[0]

    nb, tile, padded = _plan_blocks(W0, Nv, 8 * (Cs + Ct))
    xp = _pad_lanes(x3, padded)          # zero lane-padding contributes 0 to sums
    g0, g1 = Nv // nb, padded // tile

    # ---- pass 1: partial sums per grid block --------------------------------
    # NOTE: the (Ct x Cs, Cs<=8) matmul is MXU-hostile but the pass is HBM-bound,
    # so the MXU has huge slack; do not enlarge it chasing MXU utilization.
    def stats_kernel(x_ref, w_ref, ps_ref, pq_ref):
        s = jnp.zeros((Ct, 1), jnp.float32)
        q = jnp.zeros((Ct, 1), jnp.float32)
        for n in range(nb):              # static; nb > 1 only for tiny problems
            z = jnp.dot(w_ref[...], x_ref[n], preferred_element_type=jnp.float32)
            s = s + jnp.sum(z, axis=-1, keepdims=True)
            q = q + jnp.sum(z * z, axis=-1, keepdims=True)
        ps_ref[...] = s
        pq_ref[...] = q

    psum, psq = pl.pallas_call(
        stats_kernel,
        out_shape=(
            jax.ShapeDtypeStruct((g0, g1, Ct, 1), jnp.float32),
            jax.ShapeDtypeStruct((g0, g1, Ct, 1), jnp.float32),
        ),
        grid=(g0, g1),
        in_specs=[
            pl.BlockSpec((nb, Cs, tile), lambda i, t: (i, 0, t)),
            pl.BlockSpec((Ct, Cs), lambda i, t: (0, 0)),
        ],
        out_specs=(
            pl.BlockSpec((None, None, Ct, 1), lambda i, t: (i, t, 0, 0)),
            pl.BlockSpec((None, None, Ct, 1), lambda i, t: (i, t, 0, 0)),
        ),
        compiler_params=pltpu.CompilerParams(
            dimension_semantics=("parallel", "parallel"),
            vmem_limit_bytes=VMEM_LIMIT,
        ),
    )(xp, w)

    # ---- finalize (Ct numbers) in plain JAX ----------------------------------
    inv_n = 1.0 / float(true_count)
    mean = jnp.sum(psum, axis=(0, 1)) * inv_n                     # (Ct, 1)
    ex2 = jnp.sum(psq, axis=(0, 1)) * inv_n                       # (Ct, 1)
    var = jnp.maximum(ex2 - mean * mean, 0.0)                     # no NaN in rsqrt
    scale = gamma_col * jax.lax.rsqrt(var + BN_EPS)               # (Ct, 1)
    shift = beta_col - mean * scale

    # ---- pass 2: recompute z and normalize ------------------------------------
    def norm_kernel(x_ref, w_ref, scale_ref, shift_ref, o_ref):
        for n in range(nb):
            z = jnp.dot(w_ref[...], x_ref[n], preferred_element_type=jnp.float32)
            o_ref[n] = z * scale_ref[...] + shift_ref[...]

    out = pl.pallas_call(
        norm_kernel,
        out_shape=jax.ShapeDtypeStruct((Nv, Ct, padded), jnp.float32),
        grid=(g0, g1),
        in_specs=[
            pl.BlockSpec((nb, Cs, tile), lambda i, t: (i, 0, t)),
            pl.BlockSpec((Ct, Cs), lambda i, t: (0, 0)),
            pl.BlockSpec((Ct, 1), lambda i, t: (0, 0)),
            pl.BlockSpec((Ct, 1), lambda i, t: (0, 0)),
        ],
        out_specs=pl.BlockSpec((nb, Ct, tile), lambda i, t: (i, 0, t)),
        compiler_params=pltpu.CompilerParams(
            dimension_semantics=("parallel", "parallel"),
            vmem_limit_bytes=VMEM_LIMIT,
        ),
    )(xp, w, scale, shift)
    return out[:, :, :W0]


def student_transform_pallas(feat_nchw, w, gamma_col, beta_col):
    """feat: (N, Cs, H, W) -> (N, Ct, H, W). Conv1x1 + BN (train-mode stats)."""
    N, Cs, H, W = feat_nchw.shape
    Ct = w.shape[0]
    hw = H * W
    if hw >= LANE:
        out = _conv_bn_train_pallas(feat_nchw.reshape(N, Cs, hw), w,
                                    gamma_col, beta_col, true_count=N * hw)
        return out.reshape(N, Ct, H, W)
    # Small H*W (e.g. 8x8): one tiny transpose to (Cs, N*H*W) makes both passes
    # lane-dense and is reused by the stats AND normalize passes.
    xt = jnp.transpose(feat_nchw.reshape(N, Cs, hw), (1, 0, 2)).reshape(1, Cs, N * hw)
    out = _conv_bn_train_pallas(xt, w, gamma_col, beta_col, true_count=N * hw)
    out = out.reshape(Ct, N, hw)
    return jnp.transpose(out, (1, 0, 2)).reshape(N, Ct, H, W)


# ----------------------------------------------------------------------------
# Margin from teacher BN params (matches get_margin_from_BN; scalar Python glue)
# ----------------------------------------------------------------------------
def _norm_cdf(x):
    return 0.5 * (1.0 + math.erf(x / math.sqrt(2.0)))


def get_margin_from_bn(bn_weight, bn_bias):
    margins = []
    for s, m in zip(list(bn_weight), list(bn_bias)):
        s = abs(float(s))
        m = float(m)
        cdf = _norm_cdf(-m / s)
        if cdf > 0.001:
            margins.append(
                -s * math.exp(-((m / s) ** 2) / 2.0) / math.sqrt(2.0 * math.pi) / cdf + m
            )
        else:
            margins.append(-3.0 * s)
    return jnp.asarray(margins, dtype=jnp.float32)


# ----------------------------------------------------------------------------
# Synthetic teacher / student nets (plain-JAX glue; distill channels fixed)
# ----------------------------------------------------------------------------
T_CHANNELS = (8, 16)   # teacher distill channels
S_CHANNELS = (4, 8)    # student distill channels
IN_CHANNELS = 3
NUM_CLASSES = 10


def _conv1x1_nchw(x, w):
    # w: (Cout, Cin); x: (N, Cin, H, W)
    return jnp.einsum("oc,nchw->nohw", w, x)


def make_synthetic_net_params(key, channels):
    k1, k2, k3 = jax.random.split(key, 3)
    w1 = jax.random.normal(k1, (channels[0], IN_CHANNELS), jnp.float32) * 0.2
    w2 = jax.random.normal(k2, (channels[1], channels[0]), jnp.float32) * 0.2
    wo = jax.random.normal(k3, (NUM_CLASSES, channels[1]), jnp.float32) * 0.2
    return {"w1": w1, "w2": w2, "wo": wo}


def synthetic_net_forward(params, x):
    # feature 1 at full resolution, feature 2 at half resolution
    feat1 = _conv1x1_nchw(x, params["w1"])
    feat2 = _conv1x1_nchw(jax.nn.relu(feat1)[:, :, ::2, ::2], params["w2"])
    pooled = jnp.mean(feat2, axis=(2, 3))               # (N, C2)
    output = pooled @ params["wo"].T                     # (N, NUM_CLASSES)
    return {KEY_OUTPUT: output, KEY_FEAT: [feat1, feat2]}


# ----------------------------------------------------------------------------
# OFDDistiller (parameters built deterministically in-script)
# ----------------------------------------------------------------------------
def build_distiller_params(key):
    keys = jax.random.split(key, 8)
    t_params = make_synthetic_net_params(keys[0], T_CHANNELS)
    s_params = make_synthetic_net_params(keys[1], S_CHANNELS)

    # teacher "BN before ReLU" params -> margins, stored as (C, 1) columns
    margins = []
    for i, ct in enumerate(T_CHANNELS):
        gamma = jnp.abs(jax.random.normal(keys[2 + i], (ct,), jnp.float32)) + 0.5
        beta = jax.random.normal(keys[4 + i], (ct,), jnp.float32) * 0.5
        margins.append(get_margin_from_bn(gamma, beta).reshape(ct, 1))

    # student transforms: Conv2d(s_ch -> t_ch, 1x1) + BatchNorm2d(t_ch)
    # conv bias omitted: exactly cancelled by train-mode BN mean subtraction.
    s_transforms = []
    for i, (ct, cs) in enumerate(zip(T_CHANNELS, S_CHANNELS)):
        kw = jax.random.fold_in(keys[6], i)
        bound = 1.0 / math.sqrt(cs)
        conv_w = jax.random.uniform(kw, (ct, cs), jnp.float32, -bound, bound)  # (Ct, Cs)
        bn_gamma = jnp.ones((ct, 1), jnp.float32)
        bn_beta = jnp.zeros((ct, 1), jnp.float32)
        s_transforms.append({"conv_w": conv_w, "bn_gamma": bn_gamma, "bn_beta": bn_beta})

    return {
        "t_net": t_params,
        "s_net": s_params,
        "margins": margins,
        "s_transforms": s_transforms,
    }


def ofd_distiller_forward(params, x):
    t_out = synthetic_net_forward(params["t_net"], x)
    s_out = synthetic_net_forward(params["s_net"], x)

    # teacher features -> max(feat, margin)   (Pallas kernel, lane-dense blocks)
    t_transform_feats = []
    for t_feat, margin in zip(t_out[KEY_FEAT], params["margins"]):
        t_transform_feats.append(teacher_transform_pallas(t_feat, margin))

    # student features -> 1x1 conv + BN (train-mode batch stats)   (Pallas kernels)
    s_transform_feats = []
    for s_feat, tr in zip(s_out[KEY_FEAT], params["s_transforms"]):
        s_transform_feats.append(
            student_transform_pallas(s_feat, tr["conv_w"], tr["bn_gamma"], tr["bn_beta"])
        )

    return {
        KEY_OUTPUT: s_out[KEY_OUTPUT],
        KEY_T_FEAT: t_transform_feats,
        KEY_S_FEAT: s_transform_feats,
    }


# ----------------------------------------------------------------------------
# Pure-JAX references for numerical sanity checking
# ----------------------------------------------------------------------------
def _teacher_transform_ref(feat, margin_col):
    return jnp.maximum(feat, margin_col.reshape(1, -1, 1, 1))


def _student_transform_ref(feat, w, gamma_col, beta_col):
    z = jnp.einsum("oc,nchw->nohw", w, feat)
    mean = jnp.mean(z, axis=(0, 2, 3), keepdims=True)
    var = jnp.mean(jnp.square(z - mean), axis=(0, 2, 3), keepdims=True)
    g = gamma_col.reshape(1, -1, 1, 1)
    b = beta_col.reshape(1, -1, 1, 1)
    return g * (z - mean) / jnp.sqrt(var + BN_EPS) + b


# TODO(synk): the PyTorch module freezes t_net grads and updates BN running stats;
# both are training-loop side effects with no forward-pass Pallas equivalent.

if __name__ == "__main__":
    key = jax.random.PRNGKey(0)
    pkey, xkey = jax.random.split(key)
    params = build_distiller_params(pkey)

    # PyTorch-style NCHW input: batch=2, channels=3, spatial=16
    x = jax.random.normal(xkey, (2, IN_CHANNELS, 16, 16), dtype=jnp.float32)

    out = ofd_distiller_forward(params, x)
    jax.block_until_ready(out)

    # shape checks
    assert out[KEY_OUTPUT].shape == (2, NUM_CLASSES)
    assert out[KEY_T_FEAT][0].shape == (2, T_CHANNELS[0], 16, 16)
    assert out[KEY_T_FEAT][1].shape == (2, T_CHANNELS[1], 8, 8)
    assert out[KEY_S_FEAT][0].shape == (2, T_CHANNELS[0], 16, 16)
    assert out[KEY_S_FEAT][1].shape == (2, T_CHANNELS[1], 8, 8)

    # numerical checks against pure-JAX references
    t_ref = synthetic_net_forward(params["t_net"], x)[KEY_FEAT]
    s_ref = synthetic_net_forward(params["s_net"], x)[KEY_FEAT]
    for i in range(2):
        ref_t = _teacher_transform_ref(t_ref[i], params["margins"][i])
        assert jnp.allclose(out[KEY_T_FEAT][i], ref_t, atol=1e-3, rtol=1e-3)
        tr = params["s_transforms"][i]
        ref_s = _student_transform_ref(s_ref[i], tr["conv_w"], tr["bn_gamma"], tr["bn_beta"])
        assert jnp.allclose(out[KEY_S_FEAT][i], ref_s, atol=1e-3, rtol=1e-3)

    print("KERNEL_OK")
</pallas_src>

<mosaic_0001>
module attributes {stable_mosaic.version = 11 : i64} {
  func.func @_max_margin_kernel(%arg0: i32, %arg1: i32, %arg2: memref<2x8x256xf32, #tpu.memory_space<vmem>>, %arg3: memref<8x1xf32, #tpu.memory_space<vmem>>, %arg4: memref<2x8x256xf32, #tpu.memory_space<vmem>>) attributes {dimension_semantics = [#tpu.dimension_semantics<parallel>, #tpu.dimension_semantics<parallel>], iteration_bounds = array<i64: 1, 1>, scalar_prefetch = 0 : i64, scratch_operands = 0 : i64, tpu.core_type = #tpu.core_type<tc>, window_params = [{transform_indices = @transform_0, window_bounds = array<i64: 2, 8, 256>}, {pipeline_mode = #tpu.pipeline_mode<synchronous>, transform_indices = @transform_1, window_bounds = array<i64: 8, 1>}, {transform_indices = @transform_2, window_bounds = array<i64: 2, 8, 256>}]} {
    %c0 = arith.constant 0 : index
    %c0_0 = arith.constant 0 : index
    %c0_1 = arith.constant 0 : index
    %0 = vector.load %arg2[%c0, %c0_0, %c0_1] : memref<2x8x256xf32, #tpu.memory_space<vmem>>, vector<2x8x256xf32>
    %c0_2 = arith.constant 0 : index
    %c0_3 = arith.constant 0 : index
    %1 = vector.load %arg3[%c0_2, %c0_3] : memref<8x1xf32, #tpu.memory_space<vmem>>, vector<8x1xf32>
    %2 = vector.shape_cast %1 : vector<8x1xf32> to vector<1x8x1xf32>
    %3 = vector.broadcast %2 : vector<1x8x1xf32> to vector<2x8x256xf32>
    %4 = arith.maximumf %0, %3 : vector<2x8x256xf32>
    %c0_4 = arith.constant 0 : index
    %c0_5 = arith.constant 0 : index
    %c0_6 = arith.constant 0 : index
    %5 = vector.load %arg4[%c0_4, %c0_5, %c0_6] : memref<2x8x256xf32, #tpu.memory_space<vmem>>, vector<2x8x256xf32>
    tpu.vector_store %arg4[%c0_4, %c0_5, %c0_6], %4 {strides = array<i32>} : memref<2x8x256xf32, #tpu.memory_space<vmem>>, vector<2x8x256xf32>,
    return
  }
  func.func @transform_0(%arg0: i32, %arg1: i32) -> (i32, i32, i32) {
    %c0_i32 = arith.constant 0 : i32
    %c0_i32_0 = arith.constant 0 : i32
    return %arg0, %c0_i32, %arg1 : i32, i32, i32
  }
  func.func @transform_1(%arg0: i32, %arg1: i32) -> (i32, i32) {
    %c0_i32 = arith.constant 0 : i32
    %c0_i32_0 = arith.constant 0 : i32
    %c0_i32_1 = arith.constant 0 : i32
    return %c0_i32, %c0_i32_0 : i32, i32
  }
  func.func @transform_2(%arg0: i32, %arg1: i32) -> (i32, i32, i32) {
    %c0_i32 = arith.constant 0 : i32
    %c0_i32_0 = arith.constant 0 : i32
    return %arg0, %c0_i32, %arg1 : i32, i32, i32
  }
}

</mosaic_0001>

<bundles_post_ra>
// kernel: tpu_custom_call.1
= control target key start
LH: loop header
LB: loop body
LE: loop exit
PB: predicated region body
PF: predicated region fallthrough
CT: control target
= control target key end

     0   :  { %7 = vsyncpa [#allocation3], 0  ;;  %s146_s0 = inlined_call_operand.hbm [shape: f32[2,8,256], index: 0, kind: input, shape index: {}]   ;;  %s147_s1 = inlined_call_operand.vmem [shape: f32[8,1], index: 1, kind: input, shape index: {}]   ;;  %s148_s2 = inlined_call_operand.hbm [shape: f32[2,8,256], index: 2, kind: output, shape index: {}]  }
   0x1   :  { %8 = vsyncpa [#allocation4], 0  ;;  %s111_s9 = smov [#allocation2]  }
   0x2   :  { %s14_s10 = sshll.u32 %s111_s9, 4  ;;  %s15_s10 = int_to_ptr.vmem [resolvable:$true] %s14_s10 }
   0x3   :  { %s75_s11 = scalar_lea.vmem %s15_s10, 512  ;;  %p80_p1 = scmp.lt.s32.totalorder %s15_s10, %s15_s10 }
   0x4   :  { %p76_p0 = scmp.ne.s32.totalorder %s15_s10, %s75_s11  ;;  %p81_p2 = scmp.lt.s32.totalorder %s75_s11, %s75_s11 }
   0x6   :  { %p82_p3 = por %p81_p2, %p80_p1 }
   0x8   :  { %p83_p4 = pnand %p82_p3, %p76_p0 }
   0xa   :  { %86 = shalt.err (!%p83_p4)
}
   0xb   :  { %s112_s12 = smov 256   ;;  %s113_s13 = smov 16  }
   0xc   :  { %20 = dma.hbm_to_vmem [thread:$0]  %s146_s0, 512, %s15_s10, [#allocation3], %s112_s12, %s112_s12, %s113_s13  }
   0xd   :  { %107 = dma.done.wait [#allocation3], 512  }
   0xe   :  { %108 = vsyncadd [#allocation3], 4294966784  ;;  %v114_v0 = vmov 0   ;;  %v30_v1 = vld [vmem:[%s147_s1] sm:$0xff]  ;;  %v27_v3 = vld [vmem:[#allocation2 + $0x8] sm:$0xff]  ;;  %s115_s18 = smov [#allocation5]  }
   0xf   :  { %66 = vset.pattern.permute.xlu0 %v114_v0  ;;  %v26_v2 = vld [vmem:[#allocation2] sm:$0xff]  ;;  %v28_v4 = vld [vmem:[#allocation2 + $0x10] sm:$0xff]  ;;  %v29_v5 = vld [vmem:[#allocation2 + $0x18] sm:$0xff]  ;;  %s49_s19 = sshll.u32 %s115_s18, 4  ;;  %s50_s19 = int_to_ptr.vmem [resolvable:$true] %s49_s19 }
  0x10   :  { %33 = vperm.xlu0 %66, %v30_v1   ;;  %s87_s0 = scalar_lea.vmem %s50_s19, 512  ;;  %p92_p6 = scmp.lt.s32.totalorder %s50_s19, %s50_s19 }
  0x11   :  { %p88_p5 = scmp.ne.s32.totalorder %s50_s19, %s87_s0  ;;  %p93_p7 = scmp.lt.s32.totalorder %s87_s0, %s87_s0 }
  0x13   :  { %p94_p8 = por %p93_p7, %p92_p6 }
  0x15   :  { %p95_p9 = pnand %p94_p8, %p88_p5 }
  0x8b   :  { %v34_v6 = vpop.permute.xlu0 %33 }
  0x8c   :  { %v36_v7 = vmax.f32 %v26_v2, %v34_v6  ;;  %v37_v8 = vmax.f32 %v27_v3, %v34_v6  ;;  %v38_v9 = vmax.f32 %v28_v4, %v34_v6  ;;  %v39_v10 = vmax.f32 %v29_v5, %v34_v6 }
  0x8e   :  { %40 = vst [vmem:[#allocation5] sm:$0xff] %v36_v7  ;;  %41 = vst [vmem:[#allocation5 + $0x8] sm:$0xff] %v37_v8 }
  0x8f   :  { %42 = vst [vmem:[#allocation5 + $0x10] sm:$0xff] %v38_v9  ;;  %43 = vst [vmem:[#allocation5 + $0x18] sm:$0xff] %v39_v10 }
  0x90   :  { %98 = shalt.err (!%p95_p9)
}
  0x91   :  { %55 = dma.vmem_to_hbm [thread:$0]  %s50_s19, 512, %s148_s2, [#allocation4], %s112_s12, %s112_s12, %s113_s13  }
  0x92   :  { %109 = dma.done.wait [#allocation4], 512  }
  0x93   :  { %110 = vsyncadd [#allocation4], 4294966784 }
  0x94   :  { %59 = vsyncpa [#allocation3], 1 }
  0x95   :  { %60 = vsyncpa [#allocation4], 1 }

</bundles_post_ra>
